<compile_context>
chip_gen: v7x
topology: tpu7x:2x2x1
jax: 0.10.0
libtpu: 0.0.40
codegen_flags: <defaults>
</compile_context>

<pallas_src>
import math

import jax
import jax.numpy as jnp
from jax.experimental import pallas as pl
from jax.experimental.pallas import tpu as pltpu


def _pos_enc_kernel(x_ref, pe_ref, o_ref):
    # x_ref/o_ref: (bn, ts, lanes); pe_ref: (ts, lanes), broadcast over batch.
    # pe stays f32 end-to-end; the add promotes (matching torch's x + pe) and
    # the final cast to o_ref.dtype is free VPU work in a DMA-bound kernel.
    o_ref[...] = (x_ref[...] + pe_ref[...]).astype(o_ref.dtype)


def make_pe(max_len: int, d_model: int) -> jnp.ndarray:
    """Sinusoidal positional-encoding table (max_len, d_model), f32."""
    position = jnp.arange(max_len, dtype=jnp.float32)[:, None]            # (L, 1)
    div_term = jnp.exp(
        jnp.arange(0, d_model, 2, dtype=jnp.float32)
        * (-math.log(10000.0) / d_model)
    )                                                                      # (D/2,)
    args = position * div_term                                             # (L, D/2)
    pe = jnp.zeros((max_len, d_model), dtype=jnp.float32)
    pe = pe.at[:, 0::2].set(jnp.sin(args))
    pe = pe.at[:, 1::2].set(jnp.cos(args))
    return pe


def _row_tile(rows: int, lanes: int, itemsize: int, target_bytes: int) -> int:
    """Largest row tile that fits target_bytes and respects the sublane multiple."""
    sub = 8 * max(1, 4 // itemsize)          # 8 (f32), 16 (bf16), 32 (int8/fp8)
    budget = max(sub, (target_bytes // (lanes * itemsize)) // sub * sub)
    if rows <= budget:
        return rows                          # full extent is always a legal block
    return budget


def positional_encoding_forward(
    x: jnp.ndarray,
    pe: jnp.ndarray,
    *,
    target_block_bytes: int = 2 << 20,       # 2 MiB; bump to 4 MiB on v7x
    vmem_limit_bytes: int = 40 << 20,
    use_pallas: bool | None = None,
) -> jnp.ndarray:
    """x: (B, S, D); pe: (max_len, D) f32.  Returns x + pe[:S, :] (eval-mode dropout)."""
    B, S, D = x.shape
    if S > pe.shape[0]:
        raise ValueError(f"sequence length {S} exceeds positional table max_len {pe.shape[0]}")

    # Match torch promotion: f32 pe buffer promotes bf16/f16 x to f32 output.
    out_dtype = jnp.result_type(x.dtype, pe.dtype)
    itemsize = jnp.dtype(x.dtype).itemsize
    out_itemsize = jnp.dtype(out_dtype).itemsize
    pe_itemsize = jnp.dtype(pe.dtype).itemsize

    # Slice only (cheap layout op); the cast happens per-tile inside the kernel.
    pe_s = pe[:S, :]

    if use_pallas is None:
        # Tiny problems: the fused XLA add beats any pallas_call fixed overhead.
        use_pallas = x.size * itemsize >= (2 << 20)
    if not use_pallas:
        return x + pe_s[None, :, :]

    # --- lane-dense view ------------------------------------------------------
    if D % 128 == 0:
        rows, lanes = S, D
        x2, pe2 = x, pe_s
    elif (S * D) % 128 == 0:
        # Flatten (S, D) -> (S*D/128, 128); safe because pe broadcasts only over batch.
        lanes = 128
        rows = (S * D) // 128
        x2 = x.reshape(B, rows, lanes)
        pe2 = pe_s.reshape(rows, lanes)
    else:
        # Known slow path: last dim not a multiple of 128 lowers to masked
        # vst.msk partial stores.  Prefer padding D to a multiple of 128 upstream.
        rows, lanes = S, D
        x2, pe2 = x, pe_s

    ts = _row_tile(rows, lanes, itemsize, target_block_bytes)
    n_row_tiles = pl.cdiv(rows, ts)

    # Batch-widen blocks for short-row shapes so each grid step still moves
    # ~target_block_bytes and the ~0.35 us/step overhead stays amortized; this
    # also keeps enough grid steps for megacore sharding on v7x.
    row_tile_bytes = ts * lanes * itemsize
    bn = int(max(1, min(B, target_block_bytes // max(1, row_tile_bytes))))
    n_batch_tiles = pl.cdiv(B, bn)

    cost = pl.CostEstimate(
        flops=B * rows * lanes,
        transcendentals=0,
        bytes_accessed=(B * rows * lanes * itemsize            # x in
                        + rows * lanes * pe_itemsize           # pe in
                        + B * rows * lanes * out_itemsize),    # out
    )

    # Alias x to the output when dtypes match: avoids a second B*S*D HBM buffer.
    io_aliases = {0: 0} if out_dtype == x.dtype else {}

    out2 = pl.pallas_call(
        _pos_enc_kernel,
        out_shape=jax.ShapeDtypeStruct((B, rows, lanes), out_dtype),
        grid_spec=pltpu.PrefetchScalarGridSpec(
            num_scalar_prefetch=0,
            # seq tiles outer, batch inner: pe's block index is constant across
            # the inner batch loop, so its DMA is only re-issued per seq tile.
            grid=(n_row_tiles, n_batch_tiles),
            in_specs=[
                pl.BlockSpec((bn, ts, lanes), lambda s, b: (b, s, 0)),  # x block
                pl.BlockSpec((ts, lanes), lambda s, b: (s, 0)),         # shared pe block
            ],
            out_specs=pl.BlockSpec((bn, ts, lanes), lambda s, b: (b, s, 0)),
        ),
        compiler_params=pltpu.CompilerParams(
            dimension_semantics=("parallel", "parallel"),
            vmem_limit_bytes=vmem_limit_bytes,
        ),
        cost_estimate=cost,
        input_output_aliases=io_aliases,
    )(x2, pe2)

    return out2.reshape(B, S, D)


if __name__ == "__main__":
    key = jax.random.PRNGKey(0)

    # Case 1: module-consistent small shapes (B=2, S=8, D=32). S*D = 256 is a
    # multiple of 128, so this exercises the lane-dense flatten path.
    B, S, D, MAX_LEN = 2, 8, 32, 64
    x = jax.random.normal(key, (B, S, D), dtype=jnp.float32)
    pe = make_pe(MAX_LEN, D)
    ref = x + pe[None, :S, :]
    out = positional_encoding_forward(x, pe, use_pallas=True)  # force kernel path
    out = jax.block_until_ready(out)
    assert out.shape == (B, S, D) and out.dtype == ref.dtype
    assert jnp.allclose(out, ref, atol=1e-6), "mismatch vs reference (flatten path)"

    # Case 2: lane-aligned D (exercises the D % 128 == 0 path).
    B2, S2, D2 = 2, 16, 128
    x2 = jax.random.normal(jax.random.PRNGKey(1), (B2, S2, D2), dtype=jnp.float32)
    pe2 = make_pe(64, D2)
    ref2 = x2 + pe2[None, :S2, :]
    out2 = positional_encoding_forward(x2, pe2, use_pallas=True)
    out2 = jax.block_until_ready(out2)
    assert jnp.allclose(out2, ref2, atol=1e-6), "mismatch vs reference (aligned path)"

    # Case 3: ragged-D fallback path (D % 128 != 0 and S*D % 128 != 0):
    # masked partial stores, but must still be correct.
    B3, S3, D3 = 2, 10, 48
    x3 = jax.random.normal(jax.random.PRNGKey(2), (B3, S3, D3), dtype=jnp.float32)
    pe3 = make_pe(32, D3)
    ref3 = x3 + pe3[None, :S3, :]
    out3 = positional_encoding_forward(x3, pe3, use_pallas=True)
    out3 = jax.block_until_ready(out3)
    assert jnp.allclose(out3, ref3, atol=1e-6), "mismatch vs reference (ragged path)"

    # Case 4: bf16 x with f32 pe — output promotes to f32, matching torch.
    B4, S4, D4 = 2, 8, 256
    x4 = jax.random.normal(jax.random.PRNGKey(3), (B4, S4, D4)).astype(jnp.bfloat16)
    pe4 = make_pe(64, D4)
    ref4 = x4 + pe4[None, :S4, :]                      # promotes to f32
    out4 = positional_encoding_forward(x4, pe4, use_pallas=True)
    out4 = jax.block_until_ready(out4)
    assert out4.dtype == jnp.float32
    assert jnp.allclose(out4, ref4, atol=1e-6), "mismatch vs reference (bf16 promotion)"

    print("KERNEL_OK")
</pallas_src>

<mosaic_0001>
module attributes {stable_mosaic.version = 11 : i64} {
  func.func @_pos_enc_kernel(%arg0: i32, %arg1: i32, %arg2: memref<2x2x128xf32, #tpu.memory_space<vmem>>, %arg3: memref<2x128xf32, #tpu.memory_space<vmem>>, %arg4: memref<2x2x128xf32, #tpu.memory_space<vmem>>) attributes {dimension_semantics = [#tpu.dimension_semantics<parallel>, #tpu.dimension_semantics<parallel>], iteration_bounds = array<i64: 1, 1>, scalar_prefetch = 0 : i64, scratch_operands = 0 : i64, tpu.core_type = #tpu.core_type<tc>, window_params = [{transform_indices = @transform_0, window_bounds = array<i64: 2, 2, 128>}, {transform_indices = @transform_1, window_bounds = array<i64: 2, 128>}, {transform_indices = @transform_2, window_bounds = array<i64: 2, 2, 128>}]} {
    %c0 = arith.constant 0 : index
    %c0_0 = arith.constant 0 : index
    %c0_1 = arith.constant 0 : index
    %0 = vector.load %arg2[%c0, %c0_0, %c0_1] : memref<2x2x128xf32, #tpu.memory_space<vmem>>, vector<2x2x128xf32>
    %c0_2 = arith.constant 0 : index
    %c0_3 = arith.constant 0 : index
    %1 = vector.load %arg3[%c0_2, %c0_3] : memref<2x128xf32, #tpu.memory_space<vmem>>, vector<2x128xf32>
    %2 = vector.shape_cast %1 : vector<2x128xf32> to vector<1x2x128xf32>
    %3 = vector.broadcast %2 : vector<1x2x128xf32> to vector<2x2x128xf32>
    %4 = arith.addf %0, %3 : vector<2x2x128xf32>
    %c0_4 = arith.constant 0 : index
    %c0_5 = arith.constant 0 : index
    %c0_6 = arith.constant 0 : index
    %5 = vector.load %arg4[%c0_4, %c0_5, %c0_6] : memref<2x2x128xf32, #tpu.memory_space<vmem>>, vector<2x2x128xf32>
    tpu.vector_store %arg4[%c0_4, %c0_5, %c0_6], %4 {strides = array<i32>} : memref<2x2x128xf32, #tpu.memory_space<vmem>>, vector<2x2x128xf32>,
    return
  }
  func.func @transform_0(%arg0: i32, %arg1: i32) -> (i32, i32, i32) {
    %c0_i32 = arith.constant 0 : i32
    %c0_i32_0 = arith.constant 0 : i32
    return %arg1, %arg0, %c0_i32 : i32, i32, i32
  }
  func.func @transform_1(%arg0: i32, %arg1: i32) -> (i32, i32) {
    %c0_i32 = arith.constant 0 : i32
    %c0_i32_0 = arith.constant 0 : i32
    return %arg0, %c0_i32 : i32, i32
  }
  func.func @transform_2(%arg0: i32, %arg1: i32) -> (i32, i32, i32) {
    %c0_i32 = arith.constant 0 : i32
    %c0_i32_0 = arith.constant 0 : i32
    return %arg1, %arg0, %c0_i32 : i32, i32, i32
  }
}

</mosaic_0001>

<bundles_post_ra>
// kernel: tpu_custom_call.1
= control target key start
LH: loop header
LB: loop body
LE: loop exit
PB: predicated region body
PF: predicated region fallthrough
CT: control target
= control target key end

     0   :  { %7 = vsyncpa [#allocation3], 0  ;;  %s154_s0 = inlined_call_operand.hbm [shape: f32[2,2,128], index: 0, kind: input, shape index: {}, may-alias: {0,2}]   ;;  %s155_s1 = inlined_call_operand.vmem [shape: f32[2,128], index: 1, kind: input, shape index: {}]   ;;  %s156_s2 = inlined_call_operand.hbm [shape: f32[2,2,128], index: 2, kind: output, shape index: {}, may-alias: {0,2}]  }
   0x1   :  { %8 = vsyncpa [#allocation4], 0  ;;  %s102_s9 = smov [#allocation2]   ;;  %s54_s13 = scalar_lea.hbm %s154_s0, 64 }
   0x2   :  { %s14_s10 = sshll.u32 %s102_s9, 4  ;;  %p55_p0 = scmp.ne.s32.totalorder %s154_s0, %s54_s13  ;;  %s15_s10 = int_to_ptr.vmem [resolvable:$true] %s14_s10 }
   0x3   :  { %p58_p1 = scmp.lt.u32.totalorder %s54_s13, %s154_s0 }
   0x5   :  { %p60_p2 = pnand %p58_p1, %p55_p0 }
   0x7   :  { %63 = shalt.err (!%p60_p2)
}
   0x8   :  { %s64_s18 = scalar_lea.vmem %s15_s10, 64  ;;  %p69_p4 = scmp.lt.s32.totalorder %s15_s10, %s15_s10 }
   0x9   :  { %p65_p3 = scmp.ne.s32.totalorder %s15_s10, %s64_s18  ;;  %p70_p5 = scmp.lt.s32.totalorder %s64_s18, %s64_s18 }
   0xb   :  { %p71_p6 = por %p70_p5, %p69_p4 }
   0xd   :  { %p72_p7 = pnand %p71_p6, %p65_p3 }
   0xf   :  { %75 = shalt.err (!%p72_p7)
}
  0x10   :  { %s103_s19 = smov 32   ;;  %s104_s20 = smov 2  }
  0x11   :  { %20 = dma.hbm_to_vmem [thread:$0]  %s154_s0, 64, %s15_s10, [#allocation3], %s103_s19, %s103_s19, %s104_s20  }
  0x12   :  { %98 = dma.done.wait [#allocation3], 64  }
  0x13   :  { %99 = vsyncadd [#allocation3], 4294967232  ;;  %s105_s23 = smov [#allocation5]   ;;  %v26_v0 = vld [vmem:[#allocation2] sm:$0x3] }
  0x14   :  { %s38_s24 = sshll.u32 %s105_s23, 4  ;;  %v28_v1 = vld [vmem:[%s155_s1] sm:$0x3]  ;;  %v27_v2 = vld [vmem:[#allocation2 + $0x2] sm:$0x3]  ;;  %s39_s24 = int_to_ptr.vmem [resolvable:$true] %s38_s24 }
  0x15   :  { %v29_v3 = vadd.f32 %v28_v1, %v26_v0  ;;  %v30_v4 = vadd.f32 %v28_v1, %v27_v2  ;;  %s76_s27 = scalar_lea.vmem %s39_s24, 64  ;;  %p81_p9 = scmp.lt.s32.totalorder %s39_s24, %s39_s24 }
  0x16   :  { %p77_p8 = scmp.ne.s32.totalorder %s39_s24, %s76_s27  ;;  %p82_p10 = scmp.lt.s32.totalorder %s76_s27, %s76_s27 }
  0x17   :  { %31 = vst [vmem:[#allocation5] sm:$0x3] %v29_v3  ;;  %32 = vst [vmem:[#allocation5 + $0x2] sm:$0x3] %v30_v4 }
  0x18   :  { %p83_p11 = por %p82_p10, %p81_p9 }
  0x1a   :  { %p84_p12 = pnand %p83_p11, %p77_p8 }
  0x1c   :  { %87 = shalt.err (!%p84_p12)
}
  0x1d   :  { %s88_s29 = scalar_lea.hbm %s156_s2, 64 }
  0x1e   :  { %p89_p13 = scmp.ne.s32.totalorder %s156_s2, %s88_s29  ;;  %p92_p0 = scmp.lt.u32.totalorder %s88_s29, %s156_s2 }
  0x20   :  { %p94_p1 = pnand %p92_p0, %p89_p13 }
  0x22   :  { %97 = shalt.err (!%p94_p1)
}
  0x23   :  { %44 = dma.vmem_to_hbm [thread:$0]  %s39_s24, 64, %s156_s2, [#allocation4], %s103_s19, %s103_s19, %s104_s20  }
  0x24   :  { %100 = dma.done.wait [#allocation4], 64  }
  0x25   :  { %101 = vsyncadd [#allocation4], 4294967232 }
  0x26   :  { %48 = vsyncpa [#allocation3], 1 }
  0x27   :  { %49 = vsyncpa [#allocation4], 1 }

</bundles_post_ra>
